<compile_context>
chip_gen: v5e
topology: v5e:2x2
jax: 0.10.0
libtpu: 0.0.40
codegen_flags: <defaults>
</compile_context>

<pallas_src>
import jax
import jax.numpy as jnp
from jax.experimental import pallas as pl
from jax.experimental.pallas import tpu as pltpu

EPS = 1e-6


def _cls_both_kernel(lang_ref, img_ref, gamma_ref, beta_ref, w_ref, b_ref, out_ref, xn_ref):
    # Grid = (batch_tiles, out_tiles). The output axis is innermost ("arbitrary"), so for
    # each batch tile the fused add + LayerNorm runs exactly once (at j == 0) and its
    # result stays in the xn VMEM scratch for all output-column tiles of that batch tile.
    @pl.when(pl.program_id(1) == 0)
    def _compute_layernorm():
        x = (lang_ref[...] + img_ref[...]).astype(jnp.float32)          # (TB, D)
        d = x.shape[-1]
        # Fused row reductions: sum(x) and sum(x*x) (independent cross-lane reductions).
        s1 = jnp.sum(x, axis=-1, keepdims=True)
        s2 = jnp.sum(x * x, axis=-1, keepdims=True)
        mean = s1 * (1.0 / d)
        # Unbiased variance (torch .std() default, divides by N-1):
        #   sum((x - mean)^2) == s2 - mean * s1
        var = (s2 - mean * s1) * (1.0 / (d - 1))
        var = jnp.maximum(var, 0.0)          # guard tiny negatives from cancellation
        std = jnp.sqrt(var)
        # eps added to std (not var), matching the MCAN/TRAR LayerNorm. Zero-padded batch
        # rows give std == 0 -> inv = 1/eps (finite); those rows are sliced off outside.
        inv = pl.reciprocal(std + EPS, approx=False)                     # EUP, not a VALU divide
        xn = (gamma_ref[...].astype(jnp.float32) * ((x - mean) * inv)
              + beta_ref[...].astype(jnp.float32))                       # (TB, D)
        xn_ref[...] = xn.astype(xn_ref.dtype)

    # MXU matmul against one weight column tile, f32 accumulation.
    acc = jnp.dot(xn_ref[...], w_ref[...], preferred_element_type=jnp.float32)   # (TB, TO)
    out_ref[...] = (acc + b_ref[...].astype(jnp.float32)).astype(out_ref.dtype)


def _round_up(x, m):
    return ((x + m - 1) // m) * m


def _pick_block_out(O, cap=1024):
    """Lane-dense (multiple of 128) output tile that minimizes padded columns; ties -> larger."""
    hi = min(cap, _round_up(O, 128))
    best_pad, best_t = None, None
    for t in range(128, hi + 1, 128):
        pad = _round_up(O, t) - O
        if best_pad is None or pad < best_pad or (pad == best_pad and t > best_t):
            best_pad, best_t = pad, t
    return best_t


def _vmem_limit_bytes(block_batch, d, block_out, in_bytes, w_bytes, out_bytes):
    est = 2 * 2 * block_batch * d * in_bytes          # lang + img tiles, double-buffered
    est += 2 * d * block_out * w_bytes                # weight column tile, double-buffered
    est += 2 * block_batch * block_out * out_bytes    # output tile, double-buffered
    est += block_batch * d * w_bytes                  # xn scratch
    est += 4 * d * 4 + 2 * block_out * 4              # gamma/beta/bias (generous)
    # Raise v5e's 16 MiB default scoped limit; stay within v7x's 64 MiB physical VMEM.
    return int(min(max(2 * est + (8 << 20), 32 << 20), 64 << 20))


def prepare_cls_both_params(gamma, beta, weight, bias, *, block_out=None, weight_dtype=None):
    """One-time parameter prep (do NOT call per forward pass):
       pads weight/bias to a lane-dense output tiling and reshapes the 1-D params.
       gamma/beta: (D,), weight: (D, O) (= nn.Linear weight transposed), bias: (O,).
       weight_dtype=jnp.bfloat16 halves the dominant weight HBM stream (f32 accumulation
       is kept in the kernel), at ~1e-3 relative accuracy vs the f32 reference."""
    D, O = weight.shape
    if weight_dtype is not None:
        weight = weight.astype(weight_dtype)
    if block_out is None:
        block_out = _pick_block_out(O)
    O_pad = _round_up(O, block_out)
    if O_pad != O:
        weight = jnp.pad(weight, ((0, 0), (0, O_pad - O)))
        bias = jnp.pad(bias, ((0, O_pad - O),))
    return {
        "gamma": gamma.reshape(1, D),
        "beta": beta.reshape(1, D),
        "weight": weight,                # (D, O_pad)
        "bias": bias.reshape(1, O_pad),
        "block_out": block_out,
        "out_dim": O,
    }


def cls_layer_both_forward(lang_feat, img_feat, params, *, block_batch=None):
    """lang_feat, img_feat: (B, D). params from prepare_cls_both_params. Returns (B, O)."""
    B, D = lang_feat.shape
    weight = params["weight"]
    gamma2, beta2, bias2 = params["gamma"], params["beta"], params["bias"]
    block_out = params["block_out"]
    O = params["out_dim"]
    O_pad = weight.shape[1]
    out_dtype = lang_feat.dtype

    # Batch tile: aligned for the input dtype; cap 128 so B=256 gives >=2 tiles for the
    # v7x megacore split, 256 for big batches to limit weight re-streaming.
    row_align = 16 if lang_feat.dtype == jnp.bfloat16 else 8
    if block_batch is None:
        cap = 256 if B >= 512 else 128
        block_batch = min(_round_up(B, row_align), cap)
    B_pad = _round_up(B, block_batch)
    if B_pad != B:
        # Zero-padded rows stay finite through LN (std==0 -> 1/eps) and are sliced off below.
        lang_feat = jnp.pad(lang_feat, ((0, B_pad - B), (0, 0)))
        img_feat = jnp.pad(img_feat, ((0, B_pad - B), (0, 0)))

    n_b = B_pad // block_batch
    n_o = O_pad // block_out
    grid = (n_b, n_o)   # batch outer ("parallel"), output columns inner ("arbitrary")

    in_bytes = jnp.dtype(lang_feat.dtype).itemsize
    w_bytes = jnp.dtype(weight.dtype).itemsize
    out_bytes = jnp.dtype(out_dtype).itemsize

    out = pl.pallas_call(
        _cls_both_kernel,
        out_shape=jax.ShapeDtypeStruct((B_pad, O_pad), out_dtype),
        grid_spec=pltpu.PrefetchScalarGridSpec(
            num_scalar_prefetch=0,
            grid=grid,
            in_specs=[
                pl.BlockSpec((block_batch, D), lambda i, j: (i, 0)),   # lang tile (resident over j)
                pl.BlockSpec((block_batch, D), lambda i, j: (i, 0)),   # img tile  (resident over j)
                pl.BlockSpec((1, D), lambda i, j: (0, 0)),             # gamma (broadcast)
                pl.BlockSpec((1, D), lambda i, j: (0, 0)),             # beta  (broadcast)
                pl.BlockSpec((D, block_out), lambda i, j: (0, j)),     # weight column tile
                pl.BlockSpec((1, block_out), lambda i, j: (0, j)),     # bias column tile
            ],
            out_specs=pl.BlockSpec((block_batch, block_out), lambda i, j: (i, j)),
            scratch_shapes=[pltpu.VMEM((block_batch, D), weight.dtype)],  # xn (one-shot per batch tile)
        ),
        compiler_params=pltpu.CompilerParams(
            dimension_semantics=("parallel", "arbitrary"),
            vmem_limit_bytes=_vmem_limit_bytes(block_batch, D, block_out,
                                               in_bytes, w_bytes, out_bytes),
        ),
    )(lang_feat, img_feat, gamma2, beta2, weight, bias2)

    return out[:B, :O]


def reference_forward(lang_feat, img_feat, gamma, beta, weight, bias, *, precision=None):
    x = (lang_feat + img_feat).astype(jnp.float32)
    d = x.shape[-1]
    mean = jnp.mean(x, axis=-1, keepdims=True)
    diff = x - mean
    var = jnp.sum(diff * diff, axis=-1, keepdims=True) / (d - 1)   # unbiased, like torch .std()
    std = jnp.sqrt(var)
    xn = gamma * (diff / (std + EPS)) + beta
    return jnp.dot(xn, weight, precision=precision) + bias


if __name__ == "__main__":
    # Small shapes consistent with cls_layer_both(input_dim, output_dim)
    B, D, O = 16, 32, 16

    key = jax.random.PRNGKey(0)
    k_lang, k_img, k_w, k_b = jax.random.split(key, 4)

    lang_feat = jax.random.normal(k_lang, (B, D), dtype=jnp.float32)
    img_feat = jax.random.normal(k_img, (B, D), dtype=jnp.float32)

    # Deterministic synthetic parameters matching the module's shapes.
    gamma = jnp.ones((D,), dtype=jnp.float32)                           # LayerNorm a_2
    beta = jnp.zeros((D,), dtype=jnp.float32)                           # LayerNorm b_2
    weight = jax.random.normal(k_w, (D, O), dtype=jnp.float32) * 0.05   # Linear weight^T
    bias = jax.random.normal(k_b, (O,), dtype=jnp.float32) * 0.01       # Linear bias

    params = prepare_cls_both_params(gamma, beta, weight, bias)         # one-time prep (pads weight)
    out = cls_layer_both_forward(lang_feat, img_feat, params)
    out = jax.block_until_ready(out)
    assert out.shape == (B, O)

    # The MXU's f32 matmul path may or may not round operands to bf16 depending on
    # generation/compiler defaults; accept a tight match against either XLA precision mode.
    ref_hi = reference_forward(lang_feat, img_feat, gamma, beta, weight, bias,
                               precision=jax.lax.Precision.HIGHEST)
    ref_lo = reference_forward(lang_feat, img_feat, gamma, beta, weight, bias,
                               precision=jax.lax.Precision.DEFAULT)
    ok = bool(jnp.allclose(out, ref_hi, atol=1e-4, rtol=1e-4)
              or jnp.allclose(out, ref_lo, atol=1e-4, rtol=1e-4))
    assert ok, "mismatch vs reference"

    print("KERNEL_OK")
</pallas_src>

<mosaic_0001>
module attributes {stable_mosaic.version = 11 : i64} {
  func.func @_cls_both_kernel(%arg0: i32, %arg1: i32, %arg2: memref<16x32xf32, #tpu.memory_space<vmem>>, %arg3: memref<16x32xf32, #tpu.memory_space<vmem>>, %arg4: memref<1x32xf32, #tpu.memory_space<vmem>>, %arg5: memref<1x32xf32, #tpu.memory_space<vmem>>, %arg6: memref<32x128xf32, #tpu.memory_space<vmem>>, %arg7: memref<1x128xf32, #tpu.memory_space<vmem>>, %arg8: memref<16x128xf32, #tpu.memory_space<vmem>>, %arg9: memref<16x32xf32, #tpu.memory_space<vmem>>) attributes {dimension_semantics = [#tpu.dimension_semantics<parallel>, #tpu.dimension_semantics<arbitrary>], iteration_bounds = array<i64: 1, 1>, scalar_prefetch = 0 : i64, scratch_operands = 1 : i64, tpu.core_type = #tpu.core_type<tc>, window_params = [{transform_indices = @transform_0, window_bounds = array<i64: 16, 32>}, {transform_indices = @transform_1, window_bounds = array<i64: 16, 32>}, {pipeline_mode = #tpu.pipeline_mode<synchronous>, transform_indices = @transform_2, window_bounds = array<i64: 1, 32>}, {pipeline_mode = #tpu.pipeline_mode<synchronous>, transform_indices = @transform_3, window_bounds = array<i64: 1, 32>}, {transform_indices = @transform_4, window_bounds = array<i64: 32, 128>}, {transform_indices = @transform_5, window_bounds = array<i64: 1, 128>}, {transform_indices = @transform_6, window_bounds = array<i64: 16, 128>}]} {
    %c0_i32 = arith.constant 0 : i32
    %0 = arith.cmpi eq, %arg1, %c0_i32 : i32
    %1 = arith.extui %0 : i1 to i32
    %c0_i32_0 = arith.constant 0 : i32
    %2 = arith.cmpi ne, %1, %c0_i32_0 : i32
    scf.if %2 {
      %c0_8 = arith.constant 0 : index
      %c0_9 = arith.constant 0 : index
      %10 = vector.load %arg2[%c0_8, %c0_9] : memref<16x32xf32, #tpu.memory_space<vmem>>, vector<16x32xf32>
      %c0_10 = arith.constant 0 : index
      %c0_11 = arith.constant 0 : index
      %11 = vector.load %arg3[%c0_10, %c0_11] : memref<16x32xf32, #tpu.memory_space<vmem>>, vector<16x32xf32>
      %12 = arith.addf %10, %11 : vector<16x32xf32>
      %cst_12 = arith.constant dense<0.000000e+00> : vector<16xf32>
      %13 = vector.multi_reduction <add>, %12, %cst_12 [1] : vector<16x32xf32> to vector<16xf32>
      %14 = vector.shape_cast %13 : vector<16xf32> to vector<16x1xf32>
      %15 = arith.mulf %12, %12 : vector<16x32xf32>
      %cst_13 = arith.constant dense<0.000000e+00> : vector<16xf32>
      %16 = vector.multi_reduction <add>, %15, %cst_13 [1] : vector<16x32xf32> to vector<16xf32>
      %17 = vector.shape_cast %16 : vector<16xf32> to vector<16x1xf32>
      %cst_14 = arith.constant 3.125000e-02 : f32
      %18 = vector.broadcast %cst_14 : f32 to vector<16x1xf32>
      %19 = arith.mulf %14, %18 : vector<16x1xf32>
      %20 = arith.mulf %19, %14 : vector<16x1xf32>
      %21 = arith.subf %17, %20 : vector<16x1xf32>
      %cst_15 = arith.constant 0.0322580636 : f32
      %22 = vector.broadcast %cst_15 : f32 to vector<16x1xf32>
      %23 = arith.mulf %21, %22 : vector<16x1xf32>
      %cst_16 = arith.constant 0.000000e+00 : f32
      %24 = vector.broadcast %cst_16 : f32 to vector<16x1xf32>
      %25 = arith.maximumf %23, %24 : vector<16x1xf32>
      %26 = math.sqrt %25 : vector<16x1xf32>
      %cst_17 = arith.constant 9.99999997E-7 : f32
      %27 = vector.broadcast %cst_17 : f32 to vector<16x1xf32>
      %28 = arith.addf %26, %27 : vector<16x1xf32>
      %29 = tpu.reciprocal %28 : vector<16x1xf32> -> vector<16x1xf32>
      %c0_18 = arith.constant 0 : index
      %c0_19 = arith.constant 0 : index
      %30 = vector.load %arg4[%c0_18, %c0_19] : memref<1x32xf32, #tpu.memory_space<vmem>>, vector<1x32xf32>
      %31 = vector.broadcast %19 : vector<16x1xf32> to vector<16x32xf32>
      %32 = arith.subf %12, %31 : vector<16x32xf32>
      %33 = vector.broadcast %29 : vector<16x1xf32> to vector<16x32xf32>
      %34 = arith.mulf %32, %33 : vector<16x32xf32>
      %35 = vector.broadcast %30 : vector<1x32xf32> to vector<16x32xf32>
      %36 = arith.mulf %35, %34 : vector<16x32xf32>
      %c0_20 = arith.constant 0 : index
      %c0_21 = arith.constant 0 : index
      %37 = vector.load %arg5[%c0_20, %c0_21] : memref<1x32xf32, #tpu.memory_space<vmem>>, vector<1x32xf32>
      %38 = vector.broadcast %37 : vector<1x32xf32> to vector<16x32xf32>
      %39 = arith.addf %36, %38 : vector<16x32xf32>
      %c0_22 = arith.constant 0 : index
      %c0_23 = arith.constant 0 : index
      %40 = vector.load %arg9[%c0_22, %c0_23] : memref<16x32xf32, #tpu.memory_space<vmem>>, vector<16x32xf32>
      tpu.vector_store %arg9[%c0_22, %c0_23], %39 {strides = array<i32>} : memref<16x32xf32, #tpu.memory_space<vmem>>, vector<16x32xf32>,
    } else {
    }
    %c0 = arith.constant 0 : index
    %c0_1 = arith.constant 0 : index
    %3 = vector.load %arg9[%c0, %c0_1] : memref<16x32xf32, #tpu.memory_space<vmem>>, vector<16x32xf32>
    %c0_2 = arith.constant 0 : index
    %c0_3 = arith.constant 0 : index
    %4 = vector.load %arg6[%c0_2, %c0_3] : memref<32x128xf32, #tpu.memory_space<vmem>>, vector<32x128xf32>
    %cst = arith.constant dense<0.000000e+00> : vector<16x128xf32>
    %5 = tpu.matmul %3, %4, %cst {dimension_numbers = #tpu.dot_dimension_numbers<[1], [0], [0], [1], [0, 0, 1, 1], [], []>} : vector<16x32xf32>, vector<32x128xf32>, vector<16x128xf32> -> vector<16x128xf32>
    %c0_4 = arith.constant 0 : index
    %c0_5 = arith.constant 0 : index
    %6 = vector.load %arg7[%c0_4, %c0_5] : memref<1x128xf32, #tpu.memory_space<vmem>>, vector<1x128xf32>
    %7 = vector.broadcast %6 : vector<1x128xf32> to vector<16x128xf32>
    %8 = arith.addf %5, %7 : vector<16x128xf32>
    %c0_6 = arith.constant 0 : index
    %c0_7 = arith.constant 0 : index
    %9 = vector.load %arg8[%c0_6, %c0_7] : memref<16x128xf32, #tpu.memory_space<vmem>>, vector<16x128xf32>
    tpu.vector_store %arg8[%c0_6, %c0_7], %8 {strides = array<i32>} : memref<16x128xf32, #tpu.memory_space<vmem>>, vector<16x128xf32>,
    return
  }
  func.func @transform_0(%arg0: i32, %arg1: i32) -> (i32, i32) {
    %c0_i32 = arith.constant 0 : i32
    %c0_i32_0 = arith.constant 0 : i32
    return %arg0, %c0_i32 : i32, i32
  }
  func.func @transform_1(%arg0: i32, %arg1: i32) -> (i32, i32) {
    %c0_i32 = arith.constant 0 : i32
    %c0_i32_0 = arith.constant 0 : i32
    return %arg0, %c0_i32 : i32, i32
  }
  func.func @transform_2(%arg0: i32, %arg1: i32) -> (i32, i32) {
    %c0_i32 = arith.constant 0 : i32
    %c0_i32_0 = arith.constant 0 : i32
    %c0_i32_1 = arith.constant 0 : i32
    return %c0_i32, %c0_i32_0 : i32, i32
  }
  func.func @transform_3(%arg0: i32, %arg1: i32) -> (i32, i32) {
    %c0_i32 = arith.constant 0 : i32
    %c0_i32_0 = arith.constant 0 : i32
    %c0_i32_1 = arith.constant 0 : i32
    return %c0_i32, %c0_i32_0 : i32, i32
  }
  func.func @transform_4(%arg0: i32, %arg1: i32) -> (i32, i32) {
    %c0_i32 = arith.constant 0 : i32
    %c0_i32_0 = arith.constant 0 : i32
    return %c0_i32, %arg1 : i32, i32
  }
  func.func @transform_5(%arg0: i32, %arg1: i32) -> (i32, i32) {
    %c0_i32 = arith.constant 0 : i32
    %c0_i32_0 = arith.constant 0 : i32
    return %c0_i32, %arg1 : i32, i32
  }
  func.func @transform_6(%arg0: i32, %arg1: i32) -> (i32, i32) {
    %c0_i32 = arith.constant 0 : i32
    return %arg0, %arg1 : i32, i32
  }
}

</mosaic_0001>

<bundles_post_ra>
// kernel: tpu_custom_call.1
= control target key start
LH: loop header
LB: loop body
LE: loop exit
PB: predicated region body
PF: predicated region fallthrough
CT: control target
= control target key end

     0   :  { %11 = vsyncpa [#allocation4], 0  ;;  %s467_s0 = inlined_call_operand.hbm [shape: f32[16,32], index: 0, kind: input, shape index: {}]   ;;  %s468_s1 = inlined_call_operand.hbm [shape: f32[16,32], index: 1, kind: input, shape index: {}]   ;;  %s469_s2 = inlined_call_operand.vmem [shape: f32[1,32], index: 2, kind: input, shape index: {}]   ;;  %s470_s3 = inlined_call_operand.vmem [shape: f32[1,32], index: 3, kind: input, shape index: {}]   ;;  %s471_s4 = inlined_call_operand.hbm [shape: f32[32,128], index: 4, kind: input, shape index: {}]   ;;  %s472_s5 = inlined_call_operand.vmem [shape: f32[1,128], index: 5, kind: input, shape index: {}]   ;;  %s473_s6 = inlined_call_operand.hbm [shape: f32[16,128], index: 6, kind: output, shape index: {}]  }
   0x1   :  { %12 = vsyncpa [#allocation7], 0 }
   0x2   :  { %13 = vsyncpa [#allocation5], 0  ;;  %s31_s23 = sshll.u32 %s468_s1, 4  ;;  %s365_s24 = smov [#allocation6]   ;;  %s32_s23 = int_to_ptr.hbm [resolvable:$true] %s31_s23 }
   0x3   :  { %s33_s25 = sshll.u32 %s365_s24, 4  ;;  %s18_s28 = sshll.u32 %s467_s0, 4  ;;  %s34_s25 = int_to_ptr.vmem [resolvable:$true] %s33_s25  ;;  %s19_s28 = int_to_ptr.hbm [resolvable:$true] %s18_s28 }
   0x4   :  { %s366_s29 = smov 128   ;;  %s367_s30 = smov 8  }
   0x5   :  { %39 = dma.hbm_to_vmem [thread:$0]  %s32_s23, 256, %s34_s25, [#allocation7], %s366_s29, %s366_s29, %s367_s30  }
   0x6   :  { %s368_s7 = smov [#allocation3]   ;;  %s48_s1 = sshll.u32 %s471_s4, 4  ;;  %s49_s1 = int_to_ptr.hbm [resolvable:$true] %s48_s1 }
   0x7   :  { %s20_s8 = sshll.u32 %s368_s7, 4  ;;  %s369_s0 = smov [#allocation8]   ;;  %s21_s8 = int_to_ptr.vmem [resolvable:$true] %s20_s8 }
   0x8   :  { %26 = dma.hbm_to_vmem [thread:$0]  %s19_s28, 256, %s21_s8, [#allocation4], %s366_s29, %s366_s29, %s367_s30  }
   0x9   :  { %s50_s11 = sshll.u32 %s369_s0, 4  ;;  %s51_s11 = int_to_ptr.vmem [resolvable:$true] %s50_s11 }
   0xa   :  { %56 = dma.hbm_to_vmem [thread:$0]  %s49_s1, 512, %s51_s11, [#allocation7], %s366_s29, %s366_s29, %s367_s30  }
   0xb   :  { %359 = dma.done.wait [#allocation4], 256  }
   0xc   :  { %360 = vsyncadd [#allocation4], 4294967040 }
   0xd   :  { %361 = dma.done.wait [#allocation7], 768  }
   0xe   :  { %362 = vsyncadd [#allocation7], 4294966528  ;;  %v75_v0 = vld [vmem:[#allocation3] sm:$0xff]  ;;  %v77_v1 = vld [vmem:[#allocation6] sm:$0xff]  ;;  %vm81_vm0 = vcmask 261120   ;;  %s370_s15 = smov [#allocation9]  }
   0xf   :  { %v424_v2 = vadd.f32 %v77_v1, %v75_v0  ;;  %v76_v3 = vld [vmem:[#allocation3 + $0x8] sm:$0xff]  ;;  %v78_v4 = vld [vmem:[#allocation6 + $0x8] sm:$0xff]  ;;  %v182_v34 = vld [vmem:[#allocation8 + $0x10] sm:$0xff]  ;;  %s224_s16 = sshll.u32 %s370_s15, 4  ;;  %s226_s19 = sshll.u32 %s473_s6, 4  ;;  %s225_s16 = int_to_ptr.vmem [resolvable:$true] %s224_s16  ;;  %s227_s19 = int_to_ptr.hbm [resolvable:$true] %s226_s19 }
  0x10   :  { %v431_v8 = vadd.f32 %v78_v4, %v76_v3  ;;  %v183_v33 = vld [vmem:[#allocation8 + $0x18] sm:$0xff]  ;;  %v181_v37 = vld [vmem:[#allocation8 + $0x8] sm:$0xff]  ;;  %v180_v41 = vld [vmem:[#allocation8] sm:$0xff] }
  0x11   :  { %v82_v5 = vsel %vm81_vm0, %v424_v2, 0.0  ;;  %v88_v6 = vmul.f32 %v424_v2, %v424_v2  ;;  %207 = vmatpush.msra.mxu0 %v183_v33  ;;  %242 = vmatpush.msra.mxu1 %v183_v33  ;;  %v252_v63 = vld [vmem:[%s469_s2] ss:$0 sm:$0xff] }
  0x12   :  { %83 = vadd.xlane.f32.xlu0 %v82_v5  ;;  %v89_v9 = vmul.f32 %v431_v8, %v431_v8  ;;  %v85_v10 = vsel %vm81_vm0, %v431_v8, 0.0  ;;  %v253_v4 = vld [vmem:[%s470_s3] ss:$0 sm:$0xff] }
  0x13   :  { %v90_v7 = vsel %vm81_vm0, %v88_v6, 0.0  ;;  %208 = vmatpush.msra.mxu0 %v182_v34  ;;  %243 = vmatpush.msra.mxu1 %v182_v34 }
  0x14   :  { %91 = vadd.xlane.f32.xlu1 %v90_v7  ;;  %v93_v11 = vsel %vm81_vm0, %v89_v9, 0.0 }
  0x15   :  { %209 = vmatpush.msra.mxu0 %v181_v37  ;;  %244 = vmatpush.msra.mxu1 %v181_v37 }
  0x17   :  { %210 = vmatpush.msra.mxu0 %v180_v41  ;;  %245 = vmatpush.msra.mxu1 %v180_v41 }
  0x1a   :  { %86 = vadd.xlane.f32.xlu0 %v85_v10 }
  0x1c   :  { %94 = vadd.xlane.f32.xlu1 %v93_v11 }
  0x85   :  { %v84_v12 = vpop.xlane.xlu0 %83 }
  0x86   :  { %v438_v13 = vmul.f32 0.03125, %v84_v12 }
  0x87   :  { %v92_v14 = vpop.xlane.xlu1 %91 }
  0x88   :  { %v98_v15 = vmul.f32 %v438_v13, %v84_v12  ;;  %v161_v61 = vsub.f32 %v424_v2, %v438_v13 }
  0x8a   :  { %v100_v16 = vsub.f32 %v92_v14, %v98_v15 }
  0x8c   :  { %v102_v17 = vmul.f32 0.032258064, %v100_v16 }
  0x8d   :  { %v87_v18 = vpop.xlane.xlu0 %86 }
  0x8e   :  { %v104_v19 = vmax.f32 %v102_v17, 0.0  ;;  %v441_v20 = vmul.f32 0.03125, %v87_v18 }
  0x8f   :  { %v95_v21 = vpop.xlane.xlu1 %94 }
  0x90   :  { %255 = vrsqrt.f32 %v104_v19  ;;  %v99_v22 = vmul.f32 %v441_v20, %v87_v18  ;;  %vm113_vm1 = vcmp.eq.f32.partialorder %v104_v19, inf  ;;  %v116_v38 = vand.u32 2147483648, %v104_v19 }
  0x91   :  { %vm115_vm2 = vcmp.eq.f32.partialorder %v104_v19, 0.0  ;;  %v162_v13 = vsub.f32 %v431_v8, %v441_v20 }
  0x92   :  { %v101_v23 = vsub.f32 %v95_v21, %v99_v22  ;;  %v254_v22 = vld [vmem:[%s472_s5] ss:$0 sm:$0xff] }
  0x94   :  { %v103_v24 = vmul.f32 0.032258064, %v101_v23 }
  0x96   :  { %v256_v25 = vpop.eup %255  ;;  %v105_v27 = vmax.f32 %v103_v24, 0.0 }
  0x97   :  { %v107_v26 = vmul.f32 %v256_v25, %v104_v19 }
  0x98   :  { %257 = vrsqrt.f32 %v105_v27  ;;  %vm125_vm3 = vcmp.eq.f32.partialorder %v105_v27, inf  ;;  %v128_v48 = vand.u32 2147483648, %v105_v27  ;;  %vm127_vm4 = vcmp.eq.f32.partialorder %v105_v27, 0.0 }
  0x99   :  { %v108_v28 = vmul.f32 %v256_v25, %v107_v26 }
  0x9b   :  { %v109_v29 = vmul.f32 0.5, %v108_v28 }
  0x9d   :  { %v110_v30 = vsub.f32 1.5, %v109_v29 }
  0x9e   :  { %v258_v31 = vpop.eup %257 }
  0x9f   :  { %v111_v32 = vmul.f32 %v256_v25, %v110_v30  ;;  %v119_v35 = vmul.f32 %v258_v31, %v105_v27 }
  0xa1   :  { %v112_v36 = vmul.f32 %v111_v32, %v104_v19  ;;  %v120_v39 = vmul.f32 %v258_v31, %v119_v35 }
  0xa3   :  { %v114_v40 = vsel %vm113_vm1, %v104_v19, %v112_v36  ;;  %v121_v43 = vmul.f32 0.5, %v120_v39 }
  0xa4   :  { %v117_v42 = vsel %vm115_vm2, %v116_v38, %v114_v40 }
  0xa5   :  { %v130_v44 = vadd.f32 1e-06, %v117_v42  ;;  %v122_v45 = vsub.f32 1.5, %v121_v43 }
  0xa7   :  { %259 = vrcp.f32 %v130_v44  ;;  %v123_v46 = vmul.f32 %v258_v31, %v122_v45  ;;  %v143_v55 = vand.u32 2147483648, %v130_v44  ;;  %v141_v57 = vand.u32 2147483647, %v130_v44 }
  0xa8   :  { %vm137_vm6 = vweird.f32 %v130_v44 }
  0xa9   :  { %v124_v47 = vmul.f32 %v123_v46, %v105_v27  ;;  %v144_v59 = vor.u32 1.1754944e-38, %v143_v55  ;;  %vm142_vm8 = vcmp.eq.f32.partialorder %v141_v57, 8.507059e+37 }
  0xab   :  { %v126_v49 = vsel %vm125_vm3, %v105_v27, %v124_v47 }
  0xac   :  { %v129_v51 = vsel %vm127_vm4, %v128_v48, %v126_v49 }
  0xad   :  { %v260_v50 = vpop.eup %259  ;;  %v131_v53 = vadd.f32 1e-06, %v129_v51 }
  0xae   :  { %v133_v52 = vmul.f32 %v260_v50, %v130_v44  ;;  %vm138_vm5 = vweird.f32 %v260_v50 }
  0xaf   :  { %261 = vrcp.f32 %v131_v53  ;;  %vm139_vm7 = vmor %vm137_vm6, %vm138_vm5  ;;  %v157_v6 = vand.u32 2147483648, %v131_v53  ;;  %v155_v10 = vand.u32 2147483647, %v131_v53  ;;  %vm151_vm10 = vweird.f32 %v131_v53 }
  0xb0   :  { %v134_v54 = vsub.f32 1.0, %v133_v52 }
  0xb1   :  { %v158_v12 = vor.u32 1.1754944e-38, %v157_v6  ;;  %vm156_vm12 = vcmp.eq.f32.partialorder %v155_v10, 8.507059e+37 }
  0xb2   :  { %v135_v56 = vmul.f32 %v260_v50, %v134_v54 }
  0xb4   :  { %v136_v58 = vadd.f32 %v260_v50, %v135_v56 }
  0xb5   :  { %v262_v60 = vpop.eup %261 }
  0xb6   :  { %v140_v62 = vsel %vm139_vm7, %v260_v50, %v136_v58  ;;  %v147_v0 = vmul.f32 %v262_v60, %v131_v53  ;;  %vm152_vm9 = vweird.f32 %v262_v60 }
  0xb7   :  { %v145_v1 = vsel %vm142_vm8, %v144_v59, %v140_v62  ;;  %vm153_vm11 = vmor %vm151_vm10, %vm152_vm9 }
  0xb8   :  { %v163_v3 = vmul.f32 %v161_v61, %v145_v1  ;;  %v148_v5 = vsub.f32 1.0, %v147_v0 }
  0xba   :  { %v168_v7 = vmul.f32 %v252_v63, %v163_v3  ;;  %v149_v9 = vmul.f32 %v262_v60, %v148_v5 }
  0xbc   :  { %v174_v2 = vadd.f32 %v253_v4, %v168_v7  ;;  %v150_v11 = vadd.f32 %v262_v60, %v149_v9 }
  0xbe   :  { %176 = vst.msk [vmem:[#allocation2] sm:$0xff] %vm81_vm0, %v174_v2  ;;  %v154_v14 = vsel %vm153_vm11, %v262_v60, %v150_v11 }
  0xbf   :  { %v159_v15 = vsel %vm156_vm12, %v158_v12, %v154_v14 }
  0xc0   :  { %v164_v16 = vmul.f32 %v162_v13, %v159_v15 }
  0xc2   :  { %v169_v17 = vmul.f32 %v252_v63, %v164_v16 }
  0xc4   :  { %v175_v19 = vadd.f32 %v253_v4, %v169_v17 }
  0xc5   :  { %v178_v18 = vld [vmem:[#allocation2] sm:$0xff] }
  0xc6   :  { %240 = vmatmul.msk.f32.vlgmr.msra.gmra.mxu0 %vm81_vm0, %v178_v18  ;;  %177 = vst.msk [vmem:[#allocation2 + $0x8] sm:$0xff] %vm81_vm0, %v175_v19 }
  0xcd   :  { %v179_v21 = vld [vmem:[#allocation2 + $0x8] sm:$0xff] }
  0xce   :  { %241 = vmatmul.msk.f32.vlgmr.msra.gmra.mxu1 %vm81_vm0, %v179_v21 }
 0x143   :  { %v212_v23 = vpop.f32.mrf.mxu0 }
 0x144   :  { %v213_v8 = vadd.f32 %v254_v22, %v212_v23 }
 0x146   :  { %218 = vst [vmem:[#allocation9] sm:$0xff] %v213_v8 }
 0x14b   :  { %v215_v20 = vpop.f32.mrf.mxu1 }
 0x14c   :  { %v216_v24 = vadd.f32 %v254_v22, %v215_v20 }
 0x14e   :  { %219 = vst [vmem:[#allocation9 + $0x8] sm:$0xff] %v216_v24 }
 0x14f   :  { %232 = dma.vmem_to_hbm [thread:$0]  %s225_s16, 256, %s227_s19, [#allocation5], %s366_s29, %s366_s29, %s367_s30  }
 0x150   :  { %363 = dma.done.wait [#allocation5], 256  }
 0x151   :  { %364 = vsyncadd [#allocation5], 4294967040 }
 0x152   :  { %237 = vsyncpa [#allocation4], 1 }
 0x153   :  { %238 = vsyncpa [#allocation7], 1 }
 0x154   :  { %239 = vsyncpa [#allocation5], 1 }

</bundles_post_ra>
